<compile_context>
chip_gen: v7x
topology: tpu7x:2x2x1
jax: 0.10.0
libtpu: 0.0.40
codegen_flags: <defaults>
</compile_context>

<pallas_src>
import functools

import numpy as np
import jax
import jax.numpy as jnp
from jax import lax
from jax.experimental import pallas as pl
from jax.experimental.pallas import tpu as pltpu


# -------------------- host-side setup (cached, plain numpy) -----------------

@functools.lru_cache(maxsize=None)
def _bilinear_matrix(in_size, out_size):
    """1-D interpolation matrix matching F.interpolate(mode='bilinear',
    align_corners=False) along one spatial axis: out = M @ in."""
    M = np.zeros((out_size, in_size), dtype=np.float32)
    scale = in_size / out_size
    for i in range(out_size):
        src = (i + 0.5) * scale - 0.5
        src = max(src, 0.0)
        i0 = min(int(np.floor(src)), in_size - 1)
        i1 = min(i0 + 1, in_size - 1)
        frac = src - i0
        M[i, i0] += 1.0 - frac
        M[i, i1] += frac
    return M


@functools.lru_cache(maxsize=None)
def _bilinear_kron_t(H1, W1, H2, W2):
    """Dense (H1*W1, H2*W2) matrix s.t. up_flat = x1_flat @ P^T (lane-flat)."""
    A = _bilinear_matrix(H1, H2)                 # (H2, H1)
    B = _bilinear_matrix(W1, W2)                 # (W2, W1)
    P = np.kron(A, B)                            # (H2*W2, H1*W1)
    return np.ascontiguousarray(P.T)             # (H1*W1, H2*W2)


@functools.lru_cache(maxsize=None)
def _tap_masks(H2, W2):
    """0/1 validity masks for the nine 3x3 taps on the flattened spatial axis."""
    HW2 = H2 * W2
    r = np.arange(HW2) // W2
    c = np.arange(HW2) % W2
    masks = np.ones((9, 1, HW2), dtype=np.float32)
    for ky in range(3):
        for kx in range(3):
            m = np.ones(HW2, dtype=bool)
            if ky == 0:
                m &= r >= 1
            elif ky == 2:
                m &= r <= H2 - 2
            if kx == 0:
                m &= c >= 1
            elif kx == 2:
                m &= c <= W2 - 2
            masks[ky * 3 + kx, 0] = m.astype(np.float32)
    return masks


def _pick_nb(N, HW2, target_lanes):
    """Batches per grid step: fill ~target_lanes of lane work, divide N."""
    nb = max(1, min(N, max(1, target_lanes // max(HW2, 1)), 8))
    while N % nb:
        nb -= 1
    return nb


# -------------------- Pallas kernel -----------------------------------------

def _resup_kernel(x1_ref, x2_ref, Pt_ref, wt_ref, mask_ref, bup_ref,
                  w1a_ref, w1b_ref, b1_ref, out_ref, *, nb, W2, HW2):
    f32 = jnp.float32
    cdt = x1_ref.dtype

    # Hoisted, grid-invariant constant loads (tiny).
    Pt = Pt_ref[...]                                  # (H1*W1, HW2)
    wts = [wt_ref[t] for t in range(9)]               # each (C1, C1)
    msks = [mask_ref[t] for t in range(9)]            # each (1, HW2)
    bup = bup_ref[...]                                 # (C1, 1) f32
    w1a = w1a_ref[...]                                 # (Cout, C2)
    w1b = w1b_ref[...]                                 # (Cout, C1)
    b1 = b1_ref[...]                                   # (Cout, 1) f32

    # Flat-lane offsets of the eight non-center 3x3 taps.
    offs = [(t, (t // 3 - 1) * W2 + (t % 3 - 1)) for t in range(9) if t != 4]

    for b in range(nb):                                # nb is small & static
        # ---- bilinear upsample: one dense, lane-flat matmul -> (C1, HW2) ---
        up = jnp.dot(x1_ref[b], Pt, preferred_element_type=f32)
        up_c = up.astype(cdt)

        # ---- 3x3 "same" conv: center tap + 8 rolled/masked taps, ----------
        # accumulated as 9 small MXU matmuls (no (9*C1, HW2) concat buffer).
        conv = jnp.dot(wts[4], up_c, preferred_element_type=f32)
        for t, off in offs:
            tap = pltpu.roll(up_c, shift=(-off) % HW2, axis=1) * msks[t]
            conv = conv + jnp.dot(wts[t], tap, preferred_element_type=f32)

        # ---- residual + LeakyReLU(0.01) ------------------------------------
        res = conv + bup + up
        act = jnp.maximum(res, 0.01 * res)

        # ---- cat([x2, act], channel) + 1x1 conv == two channel matmuls ----
        out = (jnp.dot(w1a, x2_ref[b], preferred_element_type=f32)
               + jnp.dot(w1b, act.astype(cdt), preferred_element_type=f32)
               + b1)
        out_ref[b] = out.astype(out_ref.dtype)


# -------------------- wrapper ------------------------------------------------

def res_upsampling_block(x1_nchw, x2_nchw, params, *,
                         compute_dtype=jnp.float32, target_lanes=1024):
    N, C1, H1, W1 = x1_nchw.shape
    N2, C2, H2, W2 = x2_nchw.shape
    assert N == N2
    Cout = params["b1"].shape[0]
    H1W1, HW2 = H1 * W1, H2 * W2

    # Dense interpolation matrix (host, cached) and precomputed tap masks.
    Pt = jnp.asarray(_bilinear_kron_t(H1, W1, H2, W2), dtype=compute_dtype)
    masks = jnp.asarray(_tap_masks(H2, W2), dtype=compute_dtype)

    # upsample_conv weight (C1, C1, 3, 3) -> per-tap (9, C1, C1), t = ky*3+kx.
    wt = (jnp.transpose(params["w_up"], (2, 3, 0, 1))
          .reshape(9, C1, C1).astype(compute_dtype))
    bup = params["b_up"].reshape(C1, 1).astype(jnp.float32)
    # conv1 weight (Cout, C2+C1, 1, 1); concat order is [x2, act].
    w1 = params["w1"][:, :, 0, 0]
    w1a = w1[:, :C2].astype(compute_dtype)             # acts on x2 channels
    w1b = w1[:, C2:].astype(compute_dtype)             # acts on upsampled path
    b1 = params["b1"].reshape(Cout, 1).astype(jnp.float32)

    # Layout plumbing: pure reshapes of NCHW, no HBM transposes.
    x1f = x1_nchw.reshape(N, C1, H1W1).astype(compute_dtype)
    x2f = x2_nchw.reshape(N, C2, HW2).astype(compute_dtype)

    nb = _pick_nb(N, HW2, target_lanes)                 # batches per grid step
    grid = (N // nb,)

    def _const_spec(shape):
        zeros = (0,) * len(shape)
        return pl.BlockSpec(shape, lambda g, z=zeros: z)

    isz = jnp.dtype(compute_dtype).itemsize
    flops_per_img = 2 * (C1 * H1W1 * HW2            # upsample matmul
                         + 9 * C1 * C1 * HW2        # 3x3 conv taps
                         + Cout * (C1 + C2) * HW2)  # 1x1 conv
    bytes_accessed = int(isz * (x1f.size + x2f.size + Pt.size + wt.size
                                + masks.size + w1a.size + w1b.size)
                         + 4 * (N * Cout * HW2 + bup.size + b1.size))

    kernel = functools.partial(_resup_kernel, nb=nb, W2=W2, HW2=HW2)

    out_f = pl.pallas_call(
        kernel,
        out_shape=jax.ShapeDtypeStruct((N, Cout, HW2), jnp.float32),
        grid_spec=pltpu.PrefetchScalarGridSpec(
            num_scalar_prefetch=0,
            grid=grid,
            in_specs=[
                pl.BlockSpec((nb, C1, H1W1), lambda g: (g, 0, 0)),
                pl.BlockSpec((nb, C2, HW2), lambda g: (g, 0, 0)),
                _const_spec((H1W1, HW2)),    # Pt  (dense upsample matrix)
                _const_spec((9, C1, C1)),    # per-tap 3x3 weights
                _const_spec((9, 1, HW2)),    # tap validity masks
                _const_spec((C1, 1)),        # b_up
                _const_spec((Cout, C2)),     # w1a
                _const_spec((Cout, C1)),     # w1b
                _const_spec((Cout, 1)),      # b1
            ],
            out_specs=pl.BlockSpec((nb, Cout, HW2), lambda g: (g, 0, 0)),
        ),
        compiler_params=pltpu.CompilerParams(
            dimension_semantics=("parallel",)),
        cost_estimate=pl.CostEstimate(
            flops=N * flops_per_img, transcendentals=0,
            bytes_accessed=bytes_accessed),
    )(x1f, x2f, Pt, wt, masks, bup, w1a, w1b, b1)

    # (N, Cout, H2*W2) -> NCHW (flattening was h-major, so pure reshape).
    return out_f.reshape(N, Cout, H2, W2)


# -------------------- plain-JAX reference (for correctness check) -----------

def _reference(x1_nchw, x2_nchw, params):
    N, C1, H1, W1 = x1_nchw.shape
    _, C2, H2, W2 = x2_nchw.shape
    A = jnp.asarray(_bilinear_matrix(H1, H2))
    B = jnp.asarray(_bilinear_matrix(W1, W2))
    up = jnp.einsum("ah,nchw->ncaw", A, x1_nchw)
    up = jnp.einsum("bw,ncaw->ncab", B, up)              # (N, C1, H2, W2)
    conv = lax.conv_general_dilated(
        up, params["w_up"], (1, 1), "SAME",
        dimension_numbers=("NCHW", "OIHW", "NCHW"))
    conv = conv + params["b_up"][None, :, None, None]
    res = conv + up
    act = jnp.where(res > 0, res, 0.01 * res)
    cat = jnp.concatenate([x2_nchw, act], axis=1)
    out = jnp.einsum("nchw,oc->nohw", cat, params["w1"][:, :, 0, 0])
    return out + params["b1"][None, :, None, None]


# -------------------- main ---------------------------------------------------

if __name__ == "__main__":
    key = jax.random.PRNGKey(0)
    k1, k2, k3, k4, k5, k6 = jax.random.split(key, 6)

    N = 2
    C1, C2, Cout = 4, 4, 8        # in_channels_1, in_channels_2, out_channels
    H1, W1 = 8, 8                 # x1 spatial (to be upsampled)
    H2, W2 = 16, 16               # x2 spatial (target size)

    x1 = jax.random.normal(k1, (N, C1, H1, W1), jnp.float32)
    x2 = jax.random.normal(k2, (N, C2, H2, W2), jnp.float32)

    params = {
        "w_up": 0.2 * jax.random.normal(k3, (C1, C1, 3, 3), jnp.float32),
        "b_up": 0.1 * jax.random.normal(k4, (C1,), jnp.float32),
        "w1":   0.2 * jax.random.normal(k5, (Cout, C1 + C2, 1, 1), jnp.float32),
        "b1":   0.1 * jax.random.normal(k6, (Cout,), jnp.float32),
    }

    # jit so host-side weight prep / constant upload happen once at trace time.
    fwd = jax.jit(res_upsampling_block)
    out = jax.block_until_ready(fwd(x1, x2, params))
    ref = jax.block_until_ready(_reference(x1, x2, params))

    assert out.shape == (N, Cout, H2, W2)
    # f32 everywhere; tolerance leaves margin for MXU accumulation-order /
    # default-precision differences while still catching structural bugs.
    np.testing.assert_allclose(np.asarray(out), np.asarray(ref),
                               atol=1e-3, rtol=1e-3)
    print("KERNEL_OK")
</pallas_src>

<mosaic_0001>
module attributes {stable_mosaic.version = 11 : i64} {
  func.func @_resup_kernel(%arg0: i32, %arg1: memref<2x4x64xf32, #tpu.memory_space<vmem>>, %arg2: memref<2x4x256xf32, #tpu.memory_space<vmem>>, %arg3: memref<64x256xf32, #tpu.memory_space<vmem>>, %arg4: memref<9x4x4xf32, #tpu.memory_space<vmem>>, %arg5: memref<9x1x256xf32, #tpu.memory_space<vmem>>, %arg6: memref<4x1xf32, #tpu.memory_space<vmem>>, %arg7: memref<8x4xf32, #tpu.memory_space<vmem>>, %arg8: memref<8x4xf32, #tpu.memory_space<vmem>>, %arg9: memref<8x1xf32, #tpu.memory_space<vmem>>, %arg10: memref<2x8x256xf32, #tpu.memory_space<vmem>>) attributes {dimension_semantics = [#tpu.dimension_semantics<parallel>], iteration_bounds = array<i64: 1>, scalar_prefetch = 0 : i64, scratch_operands = 0 : i64, tpu.core_type = #tpu.core_type<tc>, window_params = [{transform_indices = @transform_0, window_bounds = array<i64: 2, 4, 64>}, {transform_indices = @transform_1, window_bounds = array<i64: 2, 4, 256>}, {pipeline_mode = #tpu.pipeline_mode<synchronous>, transform_indices = @transform_2, window_bounds = array<i64: 64, 256>}, {pipeline_mode = #tpu.pipeline_mode<synchronous>, transform_indices = @transform_3, window_bounds = array<i64: 9, 4, 4>}, {pipeline_mode = #tpu.pipeline_mode<synchronous>, transform_indices = @transform_4, window_bounds = array<i64: 9, 1, 256>}, {pipeline_mode = #tpu.pipeline_mode<synchronous>, transform_indices = @transform_5, window_bounds = array<i64: 4, 1>}, {pipeline_mode = #tpu.pipeline_mode<synchronous>, transform_indices = @transform_6, window_bounds = array<i64: 8, 4>}, {pipeline_mode = #tpu.pipeline_mode<synchronous>, transform_indices = @transform_7, window_bounds = array<i64: 8, 4>}, {pipeline_mode = #tpu.pipeline_mode<synchronous>, transform_indices = @transform_8, window_bounds = array<i64: 8, 1>}, {transform_indices = @transform_9, window_bounds = array<i64: 2, 8, 256>}]} {
    %c0 = arith.constant 0 : index
    %c0_0 = arith.constant 0 : index
    %0 = vector.load %arg3[%c0, %c0_0] : memref<64x256xf32, #tpu.memory_space<vmem>>, vector<64x256xf32>
    %c0_1 = arith.constant 0 : index
    %c0_2 = arith.constant 0 : index
    %c0_3 = arith.constant 0 : index
    %1 = vector.load %arg4[%c0_1, %c0_2, %c0_3] : memref<9x4x4xf32, #tpu.memory_space<vmem>>, vector<1x4x4xf32>
    %2 = vector.shape_cast %1 : vector<1x4x4xf32> to vector<4x4xf32>
    %c1 = arith.constant 1 : index
    %c0_4 = arith.constant 0 : index
    %c0_5 = arith.constant 0 : index
    %3 = vector.load %arg4[%c1, %c0_4, %c0_5] : memref<9x4x4xf32, #tpu.memory_space<vmem>>, vector<1x4x4xf32>
    %4 = vector.shape_cast %3 : vector<1x4x4xf32> to vector<4x4xf32>
    %c2 = arith.constant 2 : index
    %c0_6 = arith.constant 0 : index
    %c0_7 = arith.constant 0 : index
    %5 = vector.load %arg4[%c2, %c0_6, %c0_7] : memref<9x4x4xf32, #tpu.memory_space<vmem>>, vector<1x4x4xf32>
    %6 = vector.shape_cast %5 : vector<1x4x4xf32> to vector<4x4xf32>
    %c3 = arith.constant 3 : index
    %c0_8 = arith.constant 0 : index
    %c0_9 = arith.constant 0 : index
    %7 = vector.load %arg4[%c3, %c0_8, %c0_9] : memref<9x4x4xf32, #tpu.memory_space<vmem>>, vector<1x4x4xf32>
    %8 = vector.shape_cast %7 : vector<1x4x4xf32> to vector<4x4xf32>
    %c4 = arith.constant 4 : index
    %c0_10 = arith.constant 0 : index
    %c0_11 = arith.constant 0 : index
    %9 = vector.load %arg4[%c4, %c0_10, %c0_11] : memref<9x4x4xf32, #tpu.memory_space<vmem>>, vector<1x4x4xf32>
    %10 = vector.shape_cast %9 : vector<1x4x4xf32> to vector<4x4xf32>
    %c5 = arith.constant 5 : index
    %c0_12 = arith.constant 0 : index
    %c0_13 = arith.constant 0 : index
    %11 = vector.load %arg4[%c5, %c0_12, %c0_13] : memref<9x4x4xf32, #tpu.memory_space<vmem>>, vector<1x4x4xf32>
    %12 = vector.shape_cast %11 : vector<1x4x4xf32> to vector<4x4xf32>
    %c6 = arith.constant 6 : index
    %c0_14 = arith.constant 0 : index
    %c0_15 = arith.constant 0 : index
    %13 = vector.load %arg4[%c6, %c0_14, %c0_15] : memref<9x4x4xf32, #tpu.memory_space<vmem>>, vector<1x4x4xf32>
    %14 = vector.shape_cast %13 : vector<1x4x4xf32> to vector<4x4xf32>
    %c7 = arith.constant 7 : index
    %c0_16 = arith.constant 0 : index
    %c0_17 = arith.constant 0 : index
    %15 = vector.load %arg4[%c7, %c0_16, %c0_17] : memref<9x4x4xf32, #tpu.memory_space<vmem>>, vector<1x4x4xf32>
    %16 = vector.shape_cast %15 : vector<1x4x4xf32> to vector<4x4xf32>
    %c8 = arith.constant 8 : index
    %c0_18 = arith.constant 0 : index
    %c0_19 = arith.constant 0 : index
    %17 = vector.load %arg4[%c8, %c0_18, %c0_19] : memref<9x4x4xf32, #tpu.memory_space<vmem>>, vector<1x4x4xf32>
    %18 = vector.shape_cast %17 : vector<1x4x4xf32> to vector<4x4xf32>
    %c0_20 = arith.constant 0 : index
    %c0_21 = arith.constant 0 : index
    %c0_22 = arith.constant 0 : index
    %19 = vector.load %arg5[%c0_20, %c0_21, %c0_22] : memref<9x1x256xf32, #tpu.memory_space<vmem>>, vector<1x1x256xf32>
    %20 = vector.shape_cast %19 : vector<1x1x256xf32> to vector<1x256xf32>
    %c1_23 = arith.constant 1 : index
    %c0_24 = arith.constant 0 : index
    %c0_25 = arith.constant 0 : index
    %21 = vector.load %arg5[%c1_23, %c0_24, %c0_25] : memref<9x1x256xf32, #tpu.memory_space<vmem>>, vector<1x1x256xf32>
    %22 = vector.shape_cast %21 : vector<1x1x256xf32> to vector<1x256xf32>
    %c2_26 = arith.constant 2 : index
    %c0_27 = arith.constant 0 : index
    %c0_28 = arith.constant 0 : index
    %23 = vector.load %arg5[%c2_26, %c0_27, %c0_28] : memref<9x1x256xf32, #tpu.memory_space<vmem>>, vector<1x1x256xf32>
    %24 = vector.shape_cast %23 : vector<1x1x256xf32> to vector<1x256xf32>
    %c3_29 = arith.constant 3 : index
    %c0_30 = arith.constant 0 : index
    %c0_31 = arith.constant 0 : index
    %25 = vector.load %arg5[%c3_29, %c0_30, %c0_31] : memref<9x1x256xf32, #tpu.memory_space<vmem>>, vector<1x1x256xf32>
    %26 = vector.shape_cast %25 : vector<1x1x256xf32> to vector<1x256xf32>
    %c5_32 = arith.constant 5 : index
    %c0_33 = arith.constant 0 : index
    %c0_34 = arith.constant 0 : index
    %27 = vector.load %arg5[%c5_32, %c0_33, %c0_34] : memref<9x1x256xf32, #tpu.memory_space<vmem>>, vector<1x1x256xf32>
    %28 = vector.shape_cast %27 : vector<1x1x256xf32> to vector<1x256xf32>
    %c6_35 = arith.constant 6 : index
    %c0_36 = arith.constant 0 : index
    %c0_37 = arith.constant 0 : index
    %29 = vector.load %arg5[%c6_35, %c0_36, %c0_37] : memref<9x1x256xf32, #tpu.memory_space<vmem>>, vector<1x1x256xf32>
    %30 = vector.shape_cast %29 : vector<1x1x256xf32> to vector<1x256xf32>
    %c7_38 = arith.constant 7 : index
    %c0_39 = arith.constant 0 : index
    %c0_40 = arith.constant 0 : index
    %31 = vector.load %arg5[%c7_38, %c0_39, %c0_40] : memref<9x1x256xf32, #tpu.memory_space<vmem>>, vector<1x1x256xf32>
    %32 = vector.shape_cast %31 : vector<1x1x256xf32> to vector<1x256xf32>
    %c8_41 = arith.constant 8 : index
    %c0_42 = arith.constant 0 : index
    %c0_43 = arith.constant 0 : index
    %33 = vector.load %arg5[%c8_41, %c0_42, %c0_43] : memref<9x1x256xf32, #tpu.memory_space<vmem>>, vector<1x1x256xf32>
    %34 = vector.shape_cast %33 : vector<1x1x256xf32> to vector<1x256xf32>
    %c0_44 = arith.constant 0 : index
    %c0_45 = arith.constant 0 : index
    %35 = vector.load %arg6[%c0_44, %c0_45] : memref<4x1xf32, #tpu.memory_space<vmem>>, vector<4x1xf32>
    %c0_46 = arith.constant 0 : index
    %c0_47 = arith.constant 0 : index
    %36 = vector.load %arg7[%c0_46, %c0_47] : memref<8x4xf32, #tpu.memory_space<vmem>>, vector<8x4xf32>
    %c0_48 = arith.constant 0 : index
    %c0_49 = arith.constant 0 : index
    %37 = vector.load %arg8[%c0_48, %c0_49] : memref<8x4xf32, #tpu.memory_space<vmem>>, vector<8x4xf32>
    %c0_50 = arith.constant 0 : index
    %c0_51 = arith.constant 0 : index
    %38 = vector.load %arg9[%c0_50, %c0_51] : memref<8x1xf32, #tpu.memory_space<vmem>>, vector<8x1xf32>
    %c0_52 = arith.constant 0 : index
    %c0_53 = arith.constant 0 : index
    %c0_54 = arith.constant 0 : index
    %39 = vector.load %arg1[%c0_52, %c0_53, %c0_54] : memref<2x4x64xf32, #tpu.memory_space<vmem>>, vector<1x4x64xf32>
    %40 = vector.shape_cast %39 : vector<1x4x64xf32> to vector<4x64xf32>
    %cst = arith.constant dense<0.000000e+00> : vector<4x256xf32>
    %41 = tpu.matmul %40, %0, %cst {dimension_numbers = #tpu.dot_dimension_numbers<[1], [0], [0], [1], [0, 0, 1, 1], [], []>} : vector<4x64xf32>, vector<64x256xf32>, vector<4x256xf32> -> vector<4x256xf32>
    %cst_55 = arith.constant dense<0.000000e+00> : vector<4x256xf32>
    %42 = tpu.matmul %10, %41, %cst_55 {dimension_numbers = #tpu.dot_dimension_numbers<[1], [0], [0], [1], [0, 0, 1, 1], [], []>} : vector<4x4xf32>, vector<4x256xf32>, vector<4x256xf32> -> vector<4x256xf32>
    %c17_i32 = arith.constant 17 : i32
    %43 = tpu.dynamic_rotate %41 by %c17_i32 dim 1 : vector<4x256xf32>, i32 -> vector<4x256xf32>
    %44 = vector.broadcast %20 : vector<1x256xf32> to vector<4x256xf32>
    %45 = arith.mulf %43, %44 : vector<4x256xf32>
    %cst_56 = arith.constant dense<0.000000e+00> : vector<4x256xf32>
    %46 = tpu.matmul %2, %45, %cst_56 {dimension_numbers = #tpu.dot_dimension_numbers<[1], [0], [0], [1], [0, 0, 1, 1], [], []>} : vector<4x4xf32>, vector<4x256xf32>, vector<4x256xf32> -> vector<4x256xf32>
    %47 = arith.addf %42, %46 : vector<4x256xf32>
    %c16_i32 = arith.constant 16 : i32
    %48 = tpu.dynamic_rotate %41 by %c16_i32 dim 1 : vector<4x256xf32>, i32 -> vector<4x256xf32>
    %49 = vector.broadcast %22 : vector<1x256xf32> to vector<4x256xf32>
    %50 = arith.mulf %48, %49 : vector<4x256xf32>
    %cst_57 = arith.constant dense<0.000000e+00> : vector<4x256xf32>
    %51 = tpu.matmul %4, %50, %cst_57 {dimension_numbers = #tpu.dot_dimension_numbers<[1], [0], [0], [1], [0, 0, 1, 1], [], []>} : vector<4x4xf32>, vector<4x256xf32>, vector<4x256xf32> -> vector<4x256xf32>
    %52 = arith.addf %47, %51 : vector<4x256xf32>
    %c15_i32 = arith.constant 15 : i32
    %53 = tpu.dynamic_rotate %41 by %c15_i32 dim 1 : vector<4x256xf32>, i32 -> vector<4x256xf32>
    %54 = vector.broadcast %24 : vector<1x256xf32> to vector<4x256xf32>
    %55 = arith.mulf %53, %54 : vector<4x256xf32>
    %cst_58 = arith.constant dense<0.000000e+00> : vector<4x256xf32>
    %56 = tpu.matmul %6, %55, %cst_58 {dimension_numbers = #tpu.dot_dimension_numbers<[1], [0], [0], [1], [0, 0, 1, 1], [], []>} : vector<4x4xf32>, vector<4x256xf32>, vector<4x256xf32> -> vector<4x256xf32>
    %57 = arith.addf %52, %56 : vector<4x256xf32>
    %c1_i32 = arith.constant 1 : i32
    %58 = tpu.dynamic_rotate %41 by %c1_i32 dim 1 : vector<4x256xf32>, i32 -> vector<4x256xf32>
    %59 = vector.broadcast %26 : vector<1x256xf32> to vector<4x256xf32>
    %60 = arith.mulf %58, %59 : vector<4x256xf32>
    %cst_59 = arith.constant dense<0.000000e+00> : vector<4x256xf32>
    %61 = tpu.matmul %8, %60, %cst_59 {dimension_numbers = #tpu.dot_dimension_numbers<[1], [0], [0], [1], [0, 0, 1, 1], [], []>} : vector<4x4xf32>, vector<4x256xf32>, vector<4x256xf32> -> vector<4x256xf32>
    %62 = arith.addf %57, %61 : vector<4x256xf32>
    %c255_i32 = arith.constant 255 : i32
    %63 = tpu.dynamic_rotate %41 by %c255_i32 dim 1 : vector<4x256xf32>, i32 -> vector<4x256xf32>
    %64 = vector.broadcast %28 : vector<1x256xf32> to vector<4x256xf32>
    %65 = arith.mulf %63, %64 : vector<4x256xf32>
    %cst_60 = arith.constant dense<0.000000e+00> : vector<4x256xf32>
    %66 = tpu.matmul %12, %65, %cst_60 {dimension_numbers = #tpu.dot_dimension_numbers<[1], [0], [0], [1], [0, 0, 1, 1], [], []>} : vector<4x4xf32>, vector<4x256xf32>, vector<4x256xf32> -> vector<4x256xf32>
    %67 = arith.addf %62, %66 : vector<4x256xf32>
    %c241_i32 = arith.constant 241 : i32
    %68 = tpu.dynamic_rotate %41 by %c241_i32 dim 1 : vector<4x256xf32>, i32 -> vector<4x256xf32>
    %69 = vector.broadcast %30 : vector<1x256xf32> to vector<4x256xf32>
    %70 = arith.mulf %68, %69 : vector<4x256xf32>
    %cst_61 = arith.constant dense<0.000000e+00> : vector<4x256xf32>
    %71 = tpu.matmul %14, %70, %cst_61 {dimension_numbers = #tpu.dot_dimension_numbers<[1], [0], [0], [1], [0, 0, 1, 1], [], []>} : vector<4x4xf32>, vector<4x256xf32>, vector<4x256xf32> -> vector<4x256xf32>
    %72 = arith.addf %67, %71 : vector<4x256xf32>
    %c240_i32 = arith.constant 240 : i32
    %73 = tpu.dynamic_rotate %41 by %c240_i32 dim 1 : vector<4x256xf32>, i32 -> vector<4x256xf32>
    %74 = vector.broadcast %32 : vector<1x256xf32> to vector<4x256xf32>
    %75 = arith.mulf %73, %74 : vector<4x256xf32>
    %cst_62 = arith.constant dense<0.000000e+00> : vector<4x256xf32>
    %76 = tpu.matmul %16, %75, %cst_62 {dimension_numbers = #tpu.dot_dimension_numbers<[1], [0], [0], [1], [0, 0, 1, 1], [], []>} : vector<4x4xf32>, vector<4x256xf32>, vector<4x256xf32> -> vector<4x256xf32>
    %77 = arith.addf %72, %76 : vector<4x256xf32>
    %c239_i32 = arith.constant 239 : i32
    %78 = tpu.dynamic_rotate %41 by %c239_i32 dim 1 : vector<4x256xf32>, i32 -> vector<4x256xf32>
    %79 = vector.broadcast %34 : vector<1x256xf32> to vector<4x256xf32>
    %80 = arith.mulf %78, %79 : vector<4x256xf32>
    %cst_63 = arith.constant dense<0.000000e+00> : vector<4x256xf32>
    %81 = tpu.matmul %18, %80, %cst_63 {dimension_numbers = #tpu.dot_dimension_numbers<[1], [0], [0], [1], [0, 0, 1, 1], [], []>} : vector<4x4xf32>, vector<4x256xf32>, vector<4x256xf32> -> vector<4x256xf32>
    %82 = arith.addf %77, %81 : vector<4x256xf32>
    %83 = vector.broadcast %35 : vector<4x1xf32> to vector<4x256xf32>
    %84 = arith.addf %82, %83 : vector<4x256xf32>
    %85 = arith.addf %84, %41 : vector<4x256xf32>
    %cst_64 = arith.constant 0.00999999977 : f32
    %86 = vector.broadcast %cst_64 : f32 to vector<4x256xf32>
    %87 = arith.mulf %86, %85 : vector<4x256xf32>
    %88 = arith.maximumf %85, %87 : vector<4x256xf32>
    %c0_65 = arith.constant 0 : index
    %c0_66 = arith.constant 0 : index
    %c0_67 = arith.constant 0 : index
    %89 = vector.load %arg2[%c0_65, %c0_66, %c0_67] : memref<2x4x256xf32, #tpu.memory_space<vmem>>, vector<1x4x256xf32>
    %90 = vector.shape_cast %89 : vector<1x4x256xf32> to vector<4x256xf32>
    %cst_68 = arith.constant dense<0.000000e+00> : vector<8x256xf32>
    %91 = tpu.matmul %36, %90, %cst_68 {dimension_numbers = #tpu.dot_dimension_numbers<[1], [0], [0], [1], [0, 0, 1, 1], [], []>} : vector<8x4xf32>, vector<4x256xf32>, vector<8x256xf32> -> vector<8x256xf32>
    %cst_69 = arith.constant dense<0.000000e+00> : vector<8x256xf32>
    %92 = tpu.matmul %37, %88, %cst_69 {dimension_numbers = #tpu.dot_dimension_numbers<[1], [0], [0], [1], [0, 0, 1, 1], [], []>} : vector<8x4xf32>, vector<4x256xf32>, vector<8x256xf32> -> vector<8x256xf32>
    %93 = arith.addf %91, %92 : vector<8x256xf32>
    %94 = vector.broadcast %38 : vector<8x1xf32> to vector<8x256xf32>
    %95 = arith.addf %93, %94 : vector<8x256xf32>
    %c0_70 = arith.constant 0 : index
    %c0_71 = arith.constant 0 : index
    %c0_72 = arith.constant 0 : index
    %96 = vector.load %arg10[%c0_70, %c0_71, %c0_72] : memref<2x8x256xf32, #tpu.memory_space<vmem>>, vector<1x8x256xf32>
    %97 = vector.shape_cast %96 : vector<1x8x256xf32> to vector<8x256xf32>
    %98 = vector.shape_cast %95 : vector<8x256xf32> to vector<1x8x256xf32>
    tpu.vector_store %arg10[%c0_70, %c0_71, %c0_72], %98 {strides = array<i32>} : memref<2x8x256xf32, #tpu.memory_space<vmem>>, vector<1x8x256xf32>,
    %c1_73 = arith.constant 1 : index
    %c0_74 = arith.constant 0 : index
    %c0_75 = arith.constant 0 : index
    %99 = vector.load %arg1[%c1_73, %c0_74, %c0_75] : memref<2x4x64xf32, #tpu.memory_space<vmem>>, vector<1x4x64xf32>
    %100 = vector.shape_cast %99 : vector<1x4x64xf32> to vector<4x64xf32>
    %cst_76 = arith.constant dense<0.000000e+00> : vector<4x256xf32>
    %101 = tpu.matmul %100, %0, %cst_76 {dimension_numbers = #tpu.dot_dimension_numbers<[1], [0], [0], [1], [0, 0, 1, 1], [], []>} : vector<4x64xf32>, vector<64x256xf32>, vector<4x256xf32> -> vector<4x256xf32>
    %cst_77 = arith.constant dense<0.000000e+00> : vector<4x256xf32>
    %102 = tpu.matmul %10, %101, %cst_77 {dimension_numbers = #tpu.dot_dimension_numbers<[1], [0], [0], [1], [0, 0, 1, 1], [], []>} : vector<4x4xf32>, vector<4x256xf32>, vector<4x256xf32> -> vector<4x256xf32>
    %c17_i32_78 = arith.constant 17 : i32
    %103 = tpu.dynamic_rotate %101 by %c17_i32_78 dim 1 : vector<4x256xf32>, i32 -> vector<4x256xf32>
    %104 = vector.broadcast %20 : vector<1x256xf32> to vector<4x256xf32>
    %105 = arith.mulf %103, %104 : vector<4x256xf32>
    %cst_79 = arith.constant dense<0.000000e+00> : vector<4x256xf32>
    %106 = tpu.matmul %2, %105, %cst_79 {dimension_numbers = #tpu.dot_dimension_numbers<[1], [0], [0], [1], [0, 0, 1, 1], [], []>} : vector<4x4xf32>, vector<4x256xf32>, vector<4x256xf32> -> vector<4x256xf32>
    %107 = arith.addf %102, %106 : vector<4x256xf32>
    %c16_i32_80 = arith.constant 16 : i32
    %108 = tpu.dynamic_rotate %101 by %c16_i32_80 dim 1 : vector<4x256xf32>, i32 -> vector<4x256xf32>
    %109 = vector.broadcast %22 : vector<1x256xf32> to vector<4x256xf32>
    %110 = arith.mulf %108, %109 : vector<4x256xf32>
    %cst_81 = arith.constant dense<0.000000e+00> : vector<4x256xf32>
    %111 = tpu.matmul %4, %110, %cst_81 {dimension_numbers = #tpu.dot_dimension_numbers<[1], [0], [0], [1], [0, 0, 1, 1], [], []>} : vector<4x4xf32>, vector<4x256xf32>, vector<4x256xf32> -> vector<4x256xf32>
    %112 = arith.addf %107, %111 : vector<4x256xf32>
    %c15_i32_82 = arith.constant 15 : i32
    %113 = tpu.dynamic_rotate %101 by %c15_i32_82 dim 1 : vector<4x256xf32>, i32 -> vector<4x256xf32>
    %114 = vector.broadcast %24 : vector<1x256xf32> to vector<4x256xf32>
    %115 = arith.mulf %113, %114 : vector<4x256xf32>
    %cst_83 = arith.constant dense<0.000000e+00> : vector<4x256xf32>
    %116 = tpu.matmul %6, %115, %cst_83 {dimension_numbers = #tpu.dot_dimension_numbers<[1], [0], [0], [1], [0, 0, 1, 1], [], []>} : vector<4x4xf32>, vector<4x256xf32>, vector<4x256xf32> -> vector<4x256xf32>
    %117 = arith.addf %112, %116 : vector<4x256xf32>
    %c1_i32_84 = arith.constant 1 : i32
    %118 = tpu.dynamic_rotate %101 by %c1_i32_84 dim 1 : vector<4x256xf32>, i32 -> vector<4x256xf32>
    %119 = vector.broadcast %26 : vector<1x256xf32> to vector<4x256xf32>
    %120 = arith.mulf %118, %119 : vector<4x256xf32>
    %cst_85 = arith.constant dense<0.000000e+00> : vector<4x256xf32>
    %121 = tpu.matmul %8, %120, %cst_85 {dimension_numbers = #tpu.dot_dimension_numbers<[1], [0], [0], [1], [0, 0, 1, 1], [], []>} : vector<4x4xf32>, vector<4x256xf32>, vector<4x256xf32> -> vector<4x256xf32>
    %122 = arith.addf %117, %121 : vector<4x256xf32>
    %c255_i32_86 = arith.constant 255 : i32
    %123 = tpu.dynamic_rotate %101 by %c255_i32_86 dim 1 : vector<4x256xf32>, i32 -> vector<4x256xf32>
    %124 = vector.broadcast %28 : vector<1x256xf32> to vector<4x256xf32>
    %125 = arith.mulf %123, %124 : vector<4x256xf32>
    %cst_87 = arith.constant dense<0.000000e+00> : vector<4x256xf32>
    %126 = tpu.matmul %12, %125, %cst_87 {dimension_numbers = #tpu.dot_dimension_numbers<[1], [0], [0], [1], [0, 0, 1, 1], [], []>} : vector<4x4xf32>, vector<4x256xf32>, vector<4x256xf32> -> vector<4x256xf32>
    %127 = arith.addf %122, %126 : vector<4x256xf32>
    %c241_i32_88 = arith.constant 241 : i32
    %128 = tpu.dynamic_rotate %101 by %c241_i32_88 dim 1 : vector<4x256xf32>, i32 -> vector<4x256xf32>
    %129 = vector.broadcast %30 : vector<1x256xf32> to vector<4x256xf32>
    %130 = arith.mulf %128, %129 : vector<4x256xf32>
    %cst_89 = arith.constant dense<0.000000e+00> : vector<4x256xf32>
    %131 = tpu.matmul %14, %130, %cst_89 {dimension_numbers = #tpu.dot_dimension_numbers<[1], [0], [0], [1], [0, 0, 1, 1], [], []>} : vector<4x4xf32>, vector<4x256xf32>, vector<4x256xf32> -> vector<4x256xf32>
    %132 = arith.addf %127, %131 : vector<4x256xf32>
    %c240_i32_90 = arith.constant 240 : i32
    %133 = tpu.dynamic_rotate %101 by %c240_i32_90 dim 1 : vector<4x256xf32>, i32 -> vector<4x256xf32>
    %134 = vector.broadcast %32 : vector<1x256xf32> to vector<4x256xf32>
    %135 = arith.mulf %133, %134 : vector<4x256xf32>
    %cst_91 = arith.constant dense<0.000000e+00> : vector<4x256xf32>
    %136 = tpu.matmul %16, %135, %cst_91 {dimension_numbers = #tpu.dot_dimension_numbers<[1], [0], [0], [1], [0, 0, 1, 1], [], []>} : vector<4x4xf32>, vector<4x256xf32>, vector<4x256xf32> -> vector<4x256xf32>
    %137 = arith.addf %132, %136 : vector<4x256xf32>
    %c239_i32_92 = arith.constant 239 : i32
    %138 = tpu.dynamic_rotate %101 by %c239_i32_92 dim 1 : vector<4x256xf32>, i32 -> vector<4x256xf32>
    %139 = vector.broadcast %34 : vector<1x256xf32> to vector<4x256xf32>
    %140 = arith.mulf %138, %139 : vector<4x256xf32>
    %cst_93 = arith.constant dense<0.000000e+00> : vector<4x256xf32>
    %141 = tpu.matmul %18, %140, %cst_93 {dimension_numbers = #tpu.dot_dimension_numbers<[1], [0], [0], [1], [0, 0, 1, 1], [], []>} : vector<4x4xf32>, vector<4x256xf32>, vector<4x256xf32> -> vector<4x256xf32>
    %142 = arith.addf %137, %141 : vector<4x256xf32>
    %143 = vector.broadcast %35 : vector<4x1xf32> to vector<4x256xf32>
    %144 = arith.addf %142, %143 : vector<4x256xf32>
    %145 = arith.addf %144, %101 : vector<4x256xf32>
    %cst_94 = arith.constant 0.00999999977 : f32
    %146 = vector.broadcast %cst_94 : f32 to vector<4x256xf32>
    %147 = arith.mulf %146, %145 : vector<4x256xf32>
    %148 = arith.maximumf %145, %147 : vector<4x256xf32>
    %c1_95 = arith.constant 1 : index
    %c0_96 = arith.constant 0 : index
    %c0_97 = arith.constant 0 : index
    %149 = vector.load %arg2[%c1_95, %c0_96, %c0_97] : memref<2x4x256xf32, #tpu.memory_space<vmem>>, vector<1x4x256xf32>
    %150 = vector.shape_cast %149 : vector<1x4x256xf32> to vector<4x256xf32>
    %cst_98 = arith.constant dense<0.000000e+00> : vector<8x256xf32>
    %151 = tpu.matmul %36, %150, %cst_98 {dimension_numbers = #tpu.dot_dimension_numbers<[1], [0], [0], [1], [0, 0, 1, 1], [], []>} : vector<8x4xf32>, vector<4x256xf32>, vector<8x256xf32> -> vector<8x256xf32>
    %cst_99 = arith.constant dense<0.000000e+00> : vector<8x256xf32>
    %152 = tpu.matmul %37, %148, %cst_99 {dimension_numbers = #tpu.dot_dimension_numbers<[1], [0], [0], [1], [0, 0, 1, 1], [], []>} : vector<8x4xf32>, vector<4x256xf32>, vector<8x256xf32> -> vector<8x256xf32>
    %153 = arith.addf %151, %152 : vector<8x256xf32>
    %154 = vector.broadcast %38 : vector<8x1xf32> to vector<8x256xf32>
    %155 = arith.addf %153, %154 : vector<8x256xf32>
    %c1_100 = arith.constant 1 : index
    %c0_101 = arith.constant 0 : index
    %c0_102 = arith.constant 0 : index
    %156 = vector.load %arg10[%c1_100, %c0_101, %c0_102] : memref<2x8x256xf32, #tpu.memory_space<vmem>>, vector<1x8x256xf32>
    %157 = vector.shape_cast %156 : vector<1x8x256xf32> to vector<8x256xf32>
    %158 = vector.shape_cast %155 : vector<8x256xf32> to vector<1x8x256xf32>
    tpu.vector_store %arg10[%c1_100, %c0_101, %c0_102], %158 {strides = array<i32>} : memref<2x8x256xf32, #tpu.memory_space<vmem>>, vector<1x8x256xf32>,
    return
  }
  func.func @transform_0(%arg0: i32) -> (i32, i32, i32) {
    %c0_i32 = arith.constant 0 : i32
    %c0_i32_0 = arith.constant 0 : i32
    %c0_i32_1 = arith.constant 0 : i32
    return %arg0, %c0_i32, %c0_i32_0 : i32, i32, i32
  }
  func.func @transform_1(%arg0: i32) -> (i32, i32, i32) {
    %c0_i32 = arith.constant 0 : i32
    %c0_i32_0 = arith.constant 0 : i32
    %c0_i32_1 = arith.constant 0 : i32
    return %arg0, %c0_i32, %c0_i32_0 : i32, i32, i32
  }
  func.func @transform_2(%arg0: i32) -> (i32, i32) {
    %c0_i32 = arith.constant 0 : i32
    %c0_i32_0 = arith.constant 0 : i32
    %c0_i32_1 = arith.constant 0 : i32
    return %c0_i32, %c0_i32_0 : i32, i32
  }
  func.func @transform_3(%arg0: i32) -> (i32, i32, i32) {
    %c0_i32 = arith.constant 0 : i32
    %c0_i32_0 = arith.constant 0 : i32
    %c0_i32_1 = arith.constant 0 : i32
    %c0_i32_2 = arith.constant 0 : i32
    return %c0_i32, %c0_i32_0, %c0_i32_1 : i32, i32, i32
  }
  func.func @transform_4(%arg0: i32) -> (i32, i32, i32) {
    %c0_i32 = arith.constant 0 : i32
    %c0_i32_0 = arith.constant 0 : i32
    %c0_i32_1 = arith.constant 0 : i32
    %c0_i32_2 = arith.constant 0 : i32
    return %c0_i32, %c0_i32_0, %c0_i32_1 : i32, i32, i32
  }
  func.func @transform_5(%arg0: i32) -> (i32, i32) {
    %c0_i32 = arith.constant 0 : i32
    %c0_i32_0 = arith.constant 0 : i32
    %c0_i32_1 = arith.constant 0 : i32
    return %c0_i32, %c0_i32_0 : i32, i32
  }
  func.func @transform_6(%arg0: i32) -> (i32, i32) {
    %c0_i32 = arith.constant 0 : i32
    %c0_i32_0 = arith.constant 0 : i32
    %c0_i32_1 = arith.constant 0 : i32
    return %c0_i32, %c0_i32_0 : i32, i32
  }
  func.func @transform_7(%arg0: i32) -> (i32, i32) {
    %c0_i32 = arith.constant 0 : i32
    %c0_i32_0 = arith.constant 0 : i32
    %c0_i32_1 = arith.constant 0 : i32
    return %c0_i32, %c0_i32_0 : i32, i32
  }
  func.func @transform_8(%arg0: i32) -> (i32, i32) {
    %c0_i32 = arith.constant 0 : i32
    %c0_i32_0 = arith.constant 0 : i32
    %c0_i32_1 = arith.constant 0 : i32
    return %c0_i32, %c0_i32_0 : i32, i32
  }
  func.func @transform_9(%arg0: i32) -> (i32, i32, i32) {
    %c0_i32 = arith.constant 0 : i32
    %c0_i32_0 = arith.constant 0 : i32
    %c0_i32_1 = arith.constant 0 : i32
    return %arg0, %c0_i32, %c0_i32_0 : i32, i32, i32
  }
}

</mosaic_0001>

<bundles_post_ra>
// kernel: res_upsampling_block.1
= control target key start
LH: loop header
LB: loop body
LE: loop exit
PB: predicated region body
PF: predicated region fallthrough
CT: control target
= control target key end

     0   :  { %v2429_v3 = vmov 0.0   ;;  %vm85_vm0 = vcmask 523264   ;;  %s2431_s22 = smov 15   ;;  %s2432_s23 = smov 127   ;;  %v2438_v28 = vmov 0   ;;  %v164_v30 = vlaneseq  ;;  %s3042_s2 = inlined_call_operand.vmem [shape: f32[64,256], index: 2, kind: input, shape index: {}]   ;;  %s3043_s0 = inlined_call_operand.vmem [shape: f32[2,4,64], index: 0, kind: input, shape index: {}]   ;;  %s3044_s5 = inlined_call_operand.vmem [shape: f32[4,1], index: 5, kind: input, shape index: {}]   ;;  %s3045_s4 = inlined_call_operand.vmem [shape: f32[9,1,256], index: 4, kind: input, shape index: {}]   ;;  %s3046_s3 = inlined_call_operand.vmem [shape: f32[9,4,4], index: 3, kind: input, shape index: {}]   ;;  %s3047_s1 = inlined_call_operand.vmem [shape: f32[2,4,256], index: 1, kind: input, shape index: {}]   ;;  %s3048_s7 = inlined_call_operand.vmem [shape: f32[8,4], index: 7, kind: input, shape index: {}]   ;;  %s3049_s6 = inlined_call_operand.vmem [shape: f32[8,4], index: 6, kind: input, shape index: {}]   ;;  %s3050_s8 = inlined_call_operand.vmem [shape: f32[8,1], index: 8, kind: input, shape index: {}]   ;;  %s3051_s9 = inlined_call_operand.vmem [shape: f32[2,8,256], index: 9, kind: output, shape index: {}]  }
   0x1   :  { %v33_v0 = vld [vmem:[%s3042_s2 + $0x8] sm:$0xff]  ;;  %v35_v1 = vld [vmem:[%s3042_s2 + $0x18] sm:$0xff]  ;;  %v32_v2 = vld [vmem:[%s3042_s2] sm:$0xff]  ;;  %153 = vmatprep.mubr.f32.mxu0 %v2429_v3  ;;  %539 = vmatprep.mubr.f32.mxu1 %v2429_v3  ;;  %s2433_s24 = smov 17   ;;  %s2434_s25 = smov 113   ;;  %vm186_vm3 = vcmask 1043456  }
   0x2   :  { %v2500_v4 = vpack.c.bf16 %v35_v1, %v33_v0  ;;  %v34_v5 = vld [vmem:[%s3042_s2 + $0x10] sm:$0xff]  ;;  %v37_v6 = vld [vmem:[%s3042_s2 + $0x28] sm:$0xff]  ;;  %v39_v7 = vld [vmem:[%s3042_s2 + $0x38] sm:$0xff]  ;;  %s2435_s26 = smov 112   ;;  %s2436_s27 = smov 16   ;;  %2426 = vset.pattern.permute.xlu0 %v2438_v28  ;;  %v171_v31 = vshrl.u32 %v164_v30, 7 }
   0x3   :  { %v2511_v8 = vpack.c.bf16 %v34_v5, %v32_v2  ;;  %v2513_v9 = vpack.c.bf16 %v39_v7, %v37_v6  ;;  %v36_v10 = vld [vmem:[%s3042_s2 + $0x20] sm:$0xff]  ;;  %v38_v11 = vld [vmem:[%s3042_s2 + $0x30] sm:$0xff]  ;;  %v41_v12 = vld [vmem:[%s3042_s2 + $0x48] sm:$0xff]  ;;  %s2437_s28 = smov 111   ;;  %v2607_v32 = vand.u32 127, %v164_v30  ;;  %vm182_vm5 = vcmask 31744  }
   0x4   :  { %2349 = vmatprep.subr.bf16.mxu0 %v2500_v4  ;;  %v43_v13 = vld [vmem:[%s3042_s2 + $0x58] sm:$0xff]  ;;  %v2529_v14 = vpack.c.bf16 %v38_v11, %v36_v10  ;;  %v40_v16 = vld [vmem:[%s3042_s2 + $0x40] sm:$0xff]  ;;  %v42_v17 = vld [vmem:[%s3042_s2 + $0x50] sm:$0xff]  ;;  %v2609_v33 = vsub.s32 0, %v171_v31  ;;  %v2611_v34 = vsub.s32 1, %v171_v31 }
   0x5   :  { %2351 = vmatpush1.bf16.msra.mxu0 %v2511_v8  ;;  %v2532_v15 = vpack.c.bf16 %v43_v13, %v41_v12  ;;  %v45_v18 = vld [vmem:[%s3042_s2 + $0x68] sm:$0xff]  ;;  %v47_v19 = vld [vmem:[%s3042_s2 + $0x78] sm:$0xff]  ;;  %v2547_v20 = vpack.c.bf16 %v42_v17, %v40_v16  ;;  %v44_v22 = vld [vmem:[%s3042_s2 + $0x60] sm:$0xff]  ;;  %vm552_vm1 = vcmp.lt.s32.totalorder %v2607_v32, 1  ;;  %vm450_vm2 = vcmp.lt.s32.totalorder %v2607_v32, 15 }
   0x6   :  { %2353 = vmatprep.subr.bf16.mxu0 %v2513_v9  ;;  %v2550_v21 = vpack.c.bf16 %v47_v19, %v45_v18  ;;  %v46_v23 = vld [vmem:[%s3042_s2 + $0x70] sm:$0xff]  ;;  %v84_v25 = vld [vmem:[%s3043_s0] sm:$0xf]  ;;  %s2430_s2 = smov 1   ;;  %v2270_v35 = vld [vmem:[%s3045_s4 + $0x4] sm:$0x3] }
   0x7   :  { %v2559_v24 = vpack.c.bf16 %v46_v23, %v44_v22  ;;  %v80_v29 = vld [vmem:[%s3044_s5] sm:$0xf]  ;;  %v2271_v38 = vld [vmem:[%s3045_s4 + $0x6] sm:$0x3]  ;;  %v2622_v39 = vrot.slane %v2270_v35, %v2609_v33  ;;  %v2625_v40 = vrot.slane %v2270_v35, %v2611_v34  ;;  %v2272_v41 = vld [vmem:[%s3045_s4 + $0xa] sm:$0x3] }
   0x8   :  { %v2631_v42 = vrot.slane %v2271_v38, %v2609_v33  ;;  %v2634_v43 = vrot.slane %v2271_v38, %v2611_v34  ;;  %vm654_vm4 = vcmp.lt.s32.totalorder %v2607_v32, 127  ;;  %v2648_v52 = vrot.slane %v2272_v41, %v2611_v34  ;;  %v2653_v53 = vld [vmem:[%s3046_s3 + $0x8] sm:$0xf]  ;;  %v65_v54 = vld [vmem:[%s3045_s4] sm:$0x3] }
   0x9   :  { %2355 = vmatpush1.bf16.msra.mxu0 %v2529_v14  ;;  %vm166_vm6 = vcmp.lt.s32.totalorder %v2607_v32, 17  ;;  %v2670_v61 = vrot.slane %v65_v54, %v2609_v33  ;;  %v2673_v62 = vrot.slane %v65_v54, %v2611_v34  ;;  %v2273_v63 = vld [vmem:[%s3045_s4 + $0xc] sm:$0x3]  ;;  %v2682_v2 = vrot.slane %v2272_v41, %v2609_v33  ;;  %v2699_v13 = vld [vmem:[%s3046_s3] sm:$0xf] }
   0xa   :  { %2357 = vmatprep.subr.bf16.mxu0 %v2532_v15  ;;  %vm756_vm7 = vcmp.lt.s32.totalorder %v2607_v32, 113  ;;  %v2692_v11 = vrot.slane %v2273_v63, %v2611_v34  ;;  %v2705_v18 = vld [vmem:[%s3046_s3 + $0xc] sm:$0xf]  ;;  %vm858_vm8 = vcmp.lt.s32.totalorder %v2607_v32, 112  ;;  %v2732_v31 = vrot.slane %v2273_v63, %v2609_v33  ;;  %v2749_v41 = vld [vmem:[%s3046_s3 + $0x10] sm:$0xf] }
   0xb   :  { %vm348_vm9 = vcmp.lt.s32.totalorder %v2607_v32, 16  ;;  %vm960_vm10 = vcmp.lt.s32.totalorder %v2607_v32, 111 }
   0xd   :  { %2359 = vmatpush1.bf16.msra.mxu0 %v2547_v20 }
   0xe   :  { %2361 = vmatprep.subr.bf16.mxu0 %v2550_v21 }
  0x11   :  { %2363 = vmatpush1.bf16.msra.mxu0 %v2559_v24 }
  0x14   :  { %2276 = vmatmul.mubr.msk.f32.vlgmr.msra.gmra.mrb[0].mxu0 %vm85_vm0, %v84_v25  ;;  %v2269_v25 = vld [vmem:[%s3045_s4 + $0x2] sm:$0x3] }
  0x15   :  { %257 = vmatprep.mubr.f32.mxu0 %v2429_v3  ;;  %v2736_v35 = vrot.slane %v2269_v25, %v2609_v33 }
  0xe7   :  { %v2568_v26 = vpop.f32.mrb[0].mxu0 }
  0xe8   :  { %548 = vrot.lane.b32.xlu1 %v2568_v26, %s2430_s2  ;;  %446 = vrot.lane.b32.xlu0 %v2568_v26, %s2431_s22  ;;  %v2574_v27 = vpop.f32.mrb[1].mxu0 }
  0xec   :  { %550 = vrot.lane.b32.xlu1 %v2574_v27, %s2430_s2  ;;  %448 = vrot.lane.b32.xlu0 %v2574_v27, %s2431_s22 }
  0xf0   :  { %652 = vrot.lane.b32.xlu1 %v2574_v27, %s2432_s23  ;;  %650 = vrot.lane.b32.xlu0 %v2568_v26, %s2432_s23 }
  0xf4   :  { %162 = vrot.lane.b32.xlu1 %v2574_v27, %s2433_s24  ;;  %160 = vrot.lane.b32.xlu0 %v2568_v26, %s2433_s24 }
  0xf8   :  { %754 = vrot.lane.b32.xlu1 %v2574_v27, %s2434_s25  ;;  %752 = vrot.lane.b32.xlu0 %v2568_v26, %s2434_s25 }
  0xfc   :  { %856 = vrot.lane.b32.xlu1 %v2574_v27, %s2435_s26  ;;  %854 = vrot.lane.b32.xlu0 %v2568_v26, %s2435_s26 }
 0x100   :  { %346 = vrot.lane.b32.xlu1 %v2574_v27, %s2436_s27  ;;  %344 = vrot.lane.b32.xlu0 %v2568_v26, %s2436_s27 }
 0x104   :  { %958 = vrot.lane.b32.xlu1 %v2574_v27, %s2437_s28  ;;  %956 = vrot.lane.b32.xlu0 %v2568_v26, %s2437_s28 }
 0x108   :  { %1060 = vperm.xlu0 %2426, %v80_v29   ;;  %v2274_v29 = vld [vmem:[%s3045_s4 + $0xe] sm:$0x3] }
 0x109   :  { %v2744_v38 = vrot.slane %v2274_v29, %v2611_v34 }
 0x15a   :  { %v549_v36 = vpop.permute.xlu1 %548  ;;  %v447_v37 = vpop.permute.xlu0 %446 }
 0x15e   :  { %v551_v44 = vpop.permute.xlu1 %550  ;;  %v449_v45 = vpop.permute.xlu0 %448 }
 0x15f   :  { %v553_v46 = vsel %vm552_vm1, %v549_v36, %v551_v44  ;;  %v451_v47 = vsel %vm450_vm2, %v447_v37, %v449_v45  ;;  %v452_v48 = vsel %vm450_vm2, %v449_v45, %v447_v37  ;;  %v554_v49 = vsel %vm552_vm1, %v551_v44, %v549_v36 }
 0x160   :  { %v464_v50 = vmul.f32 %v2622_v39, %v452_v48  ;;  %v465_v51 = vmul.f32 %v2625_v40, %v451_v47  ;;  %v567_v55 = vmul.f32 %v2634_v43, %v553_v46  ;;  %v566_v58 = vmul.f32 %v2631_v42, %v554_v49  ;;  %v2756_v47 = vld [vmem:[%s3046_s3 + $0x14] sm:$0xf] }
 0x161   :  { %v2739_v36 = vrot.slane %v2269_v25, %v2611_v34 }
 0x162   :  { %v653_v56 = vpop.permute.xlu1 %652  ;;  %2286 = vmatprep.subr.msk.mxu1 %vm186_vm3, %v465_v51  ;;  %v651_v57 = vpop.permute.xlu0 %650 }
 0x163   :  { %v656_v59 = vsel %vm654_vm4, %v653_v56, %v651_v57  ;;  %2287 = vmatpush1.msk.msra.mxu1 %vm186_vm3, %v464_v50  ;;  %v655_v12 = vsel %vm654_vm4, %v651_v57, %v653_v56  ;;  %v2275_v56 = vld [vmem:[%s3045_s4 + $0x10] sm:$0x3] }
 0x164   :  { %v669_v60 = vmul.f32 %v2648_v52, %v656_v59  ;;  %2288 = vmatmul.mubr.msk.f32.vlgmr.msra.gmra.mrb[0].mxu1 %vm182_vm5, %v2653_v53  ;;  %2289 = vmatprep.subr.msk.mxu1 %vm186_vm3, %v567_v55  ;;  %v668_v22 = vmul.f32 %v2682_v2, %v655_v12  ;;  %v2780_v59 = vrot.slane %v2274_v29, %v2609_v33  ;;  %v2818_v12 = vld [vmem:[%s3046_s3 + $0x1c] sm:$0xf] }
 0x165   :  { %2290 = vmatpush1.msk.msra.mxu1 %vm186_vm3, %v566_v58  ;;  %641 = vmatprep.mubr.f32.mxu1 %v2429_v3  ;;  %v2786_v63 = vrot.slane %v2275_v56, %v2611_v34 }
 0x166   :  { %v163_v0 = vpop.permute.xlu1 %162  ;;  %2292 = vmatprep.subr.msk.mxu1 %vm186_vm3, %v669_v60  ;;  %v161_v1 = vpop.permute.xlu0 %160 }
 0x167   :  { %v167_v5 = vsel %vm166_vm6, %v161_v1, %v163_v0  ;;  %v168_v6 = vsel %vm166_vm6, %v163_v0, %v161_v1  ;;  %v2791_v0 = vld [vmem:[%s3046_s3 + $0x4] sm:$0xf] }
 0x168   :  { %v180_v7 = vmul.f32 %v2670_v61, %v168_v6  ;;  %v181_v10 = vmul.f32 %v2673_v62, %v167_v5  ;;  %v2798_v5 = vld [vmem:[%s3046_s3 + $0x18] sm:$0xf] }
 0x16a   :  { %v755_v16 = vpop.permute.xlu1 %754  ;;  %2277 = vmatprep.subr.msk.mxu0 %vm186_vm3, %v181_v10  ;;  %v753_v17 = vpop.permute.xlu0 %752 }
 0x16b   :  { %v758_v19 = vsel %vm756_vm7, %v755_v16, %v753_v17  ;;  %2278 = vmatpush1.msk.msra.mxu0 %vm186_vm3, %v180_v7  ;;  %v757_v37 = vsel %vm756_vm7, %v753_v17, %v755_v16  ;;  %v2811_v7 = vrot.slane %v2275_v56, %v2609_v33  ;;  %v2828_v33 = vld [vmem:[%s3046_s3 + $0x20] sm:$0xf] }
 0x16c   :  { %v771_v23 = vmul.f32 %v2692_v11, %v758_v19  ;;  %2279 = vmatmul.mubr.msk.f32.vlgmr.msra.gmra.mrb[2].mxu0 %vm182_vm5, %v2699_v13  ;;  %2280 = vmatprep.subr.msk.mxu0 %vm186_vm3, %v2574_v27  ;;  %v770_v50 = vmul.f32 %v2732_v31, %v757_v37 }
 0x16d   :  { %2291 = vmatmul.mubr.msk.f32.vlgmr.msra.gmra.mrb[0].mxu1 %vm182_vm5, %v2705_v18  ;;  %2281 = vmatpush1.msk.msra.mxu0 %vm186_vm3, %v2568_v26 }
 0x16e   :  { %2293 = vmatpush1.msk.msra.mxu1 %vm186_vm3, %v668_v22  ;;  %v857_v28 = vpop.permute.xlu1 %856  ;;  %v855_v30 = vpop.permute.xlu0 %854  ;;  %337 = vmatprep.mubr.f32.mxu0 %v2429_v3 }
 0x16f   :  { %2295 = vmatprep.subr.msk.mxu1 %vm186_vm3, %v771_v23  ;;  %743 = vmatprep.mubr.f32.mxu1 %v2429_v3  ;;  %v860_v44 = vsel %vm858_vm8, %v857_v28, %v855_v30  ;;  %v859_v60 = vsel %vm858_vm8, %v855_v30, %v857_v28 }
 0x170   :  { %v873_v55 = vmul.f32 %v2744_v38, %v860_v44  ;;  %v872_v6 = vmul.f32 %v2780_v59, %v859_v60 }
 0x172   :  { %v347_v45 = vpop.permute.xlu1 %346  ;;  %v345_v46 = vpop.permute.xlu0 %344 }
 0x173   :  { %v349_v48 = vsel %vm348_vm9, %v345_v46, %v347_v45  ;;  %v350_v49 = vsel %vm348_vm9, %v347_v45, %v345_v46 }
 0x174   :  { %v362_v51 = vmul.f32 %v2736_v35, %v350_v49  ;;  %v363_v54 = vmul.f32 %v2739_v36, %v349_v48  ;;  %2282 = vmatmul.mubr.msk.f32.vlgmr.msra.gmra.mrb[2].mxu0 %vm182_vm5, %v2749_v41  ;;  %v1071_v48 = vld [vmem:[%s3047_s1] sm:$0xff] }
 0x175   :  { %2294 = vmatmul.mubr.msk.f32.vlgmr.msra.gmra.mrb[0].mxu1 %vm182_vm5, %v2756_v47  ;;  %437 = vmatprep.mubr.f32.mxu0 %v2429_v3 }
 0x176   :  { %2296 = vmatpush1.msk.msra.mxu1 %vm186_vm3, %v770_v50  ;;  %2283 = vmatprep.subr.msk.mxu0 %vm186_vm3, %v363_v54  ;;  %v959_v57 = vpop.permute.xlu1 %958  ;;  %v957_v58 = vpop.permute.xlu0 %956 }
 0x177   :  { %2298 = vmatprep.subr.msk.mxu1 %vm186_vm3, %v873_v55  ;;  %2284 = vmatpush1.msk.msra.mxu0 %vm186_vm3, %v362_v51  ;;  %v962_v1 = vsel %vm960_vm10, %v959_v57, %v957_v58  ;;  %v961_v10 = vsel %vm960_vm10, %v957_v58, %v959_v57  ;;  %v1153_v51 = vcombine.high %v1071_v48, %v1071_v48  ;;  %v2845_v55 = vld [vmem:[%s3048_s7] sm:$0xff] }
 0x178   :  { %845 = vmatprep.mubr.f32.mxu1 %v2429_v3  ;;  %v975_v34 = vmul.f32 %v2786_v63, %v962_v1  ;;  %v974_v16 = vmul.f32 %v2811_v7, %v961_v10 }
 0x17c   :  { %2285 = vmatmul.mubr.msk.f32.vlgmr.msra.gmra.mrb[2].mxu0 %vm182_vm5, %v2791_v0 }
 0x17d   :  { %2297 = vmatmul.mubr.msk.f32.vlgmr.msra.gmra.mrb[0].mxu1 %vm182_vm5, %v2798_v5  ;;  %1145 = vmatprep.mubr.f32.mxu0 %v2429_v3 }
 0x17e   :  { %2299 = vmatpush1.msk.msra.mxu1 %vm186_vm3, %v872_v6  ;;  %947 = vmatprep.mubr.f32.mxu1 %v2429_v3 }
 0x17f   :  { %2301 = vmatprep.subr.msk.mxu1 %vm186_vm3, %v975_v34 }
 0x185   :  { %2300 = vmatmul.mubr.msk.f32.vlgmr.msra.gmra.mrb[0].mxu1 %vm182_vm5, %v2818_v12 }
 0x186   :  { %2302 = vmatpush1.msk.msra.mxu1 %vm186_vm3, %v974_v16  ;;  %1049 = vmatprep.mubr.f32.mxu1 %v2429_v3 }
 0x187   :  { %v2833_v23 = vpop.permute.xlu0 %1060 }
 0x18d   :  { %2303 = vmatmul.mubr.msk.f32.vlgmr.msra.gmra.mrb[0].mxu1 %vm182_vm5, %v2828_v33 }
 0x18e   :  { %1395 = vmatprep.mubr.f32.mxu1 %v2429_v3 }
 0x24f   :  { %v439_v17 = vpop.f32.mrb[2].mxu0 }
 0x250   :  { %v441_v19 = vpop.f32.mrb[3].mxu0 }
 0x260   :  { %v1051_v22 = vpop.f32.mrb[0].mxu1 }
 0x261   :  { %v2380_v25 = vadd.f32 %v1051_v22, %v439_v17  ;;  %v1053_v28 = vpop.f32.mrb[1].mxu1 }
 0x262   :  { %v2381_v29 = vadd.f32 %v1053_v28, %v441_v19 }
 0x263   :  { %v1063_v30 = vadd.f32 %v2380_v25, %v2833_v23 }
 0x264   :  { %v1064_v37 = vadd.f32 %v2381_v29, %v2833_v23 }
 0x265   :  { %v1065_v44 = vadd.f32 %v1063_v30, %v2568_v26  ;;  %v2858_v26 = vld [vmem:[%s3049_s6] sm:$0xff] }
 0x266   :  { %v1066_v45 = vadd.f32 %v1064_v37, %v2574_v27 }
 0x267   :  { %v1067_v46 = vmul.f32 0.01, %v1065_v44 }
 0x268   :  { %v1068_v49 = vmul.f32 0.01, %v1066_v45 }
 0x269   :  { %v1069_v54 = vmax.f32 %v1065_v44, %v1067_v46 }
 0x26a   :  { %v1070_v50 = vmax.f32 %v1066_v45, %v1068_v49 }
 0x26c   :  { %2304 = vmatprep.subr.msk.mxu0 %vm186_vm3, %v1070_v50 }
 0x26d   :  { %2305 = vmatpush1.msk.msra.mxu0 %vm186_vm3, %v1069_v54 }
 0x26e   :  { %2306 = vmatmul.mubr.msk.f32.vlgmr.msra.gmra.mrb[4].mxu0 %vm182_vm5, %v2845_v55  ;;  %2307 = vmatprep.subr.msk.mxu0 %vm186_vm3, %v1153_v51 }
 0x26f   :  { %2308 = vmatpush1.msk.msra.mxu0 %vm186_vm3, %v1071_v48  ;;  %1225 = vmatprep.mubr.f32.mxu0 %v2429_v3 }
 0x270   :  { %2365 = vmatprep.subr.bf16.mxu0 %v2500_v4  ;;  %v2310_v4 = vld [vmem:[%s3043_s0 + $0x4] sm:$0xf] }
 0x276   :  { %2309 = vmatmul.mubr.msk.f32.vlgmr.msra.gmra.mrb[4].mxu0 %vm182_vm5, %v2858_v26 }
 0x277   :  { %2367 = vmatpush1.bf16.msra.mxu0 %v2511_v8  ;;  %1310 = vmatprep.mubr.f32.mxu0 %v2429_v3 }
 0x278   :  { %2369 = vmatprep.subr.bf16.mxu0 %v2513_v9 }
 0x27b   :  { %2371 = vmatpush1.bf16.msra.mxu0 %v2529_v14 }
 0x27c   :  { %2373 = vmatprep.subr.bf16.mxu0 %v2532_v15 }
 0x27f   :  { %2375 = vmatpush1.bf16.msra.mxu0 %v2547_v20  ;;  %v83_v20 = vld [vmem:[%s3050_s8] sm:$0xff] }
 0x280   :  { %2377 = vmatprep.subr.bf16.mxu0 %v2550_v21 }
 0x283   :  { %2379 = vmatpush1.bf16.msra.mxu0 %v2559_v24 }
 0x286   :  { %2311 = vmatmul.mubr.msk.f32.vlgmr.msra.gmra.mrb[6].mxu0 %vm85_vm0, %v2310_v4 }
 0x287   :  { %2168 = vmatprep.mubr.f32.mxu0 %v2429_v3 }
 0x349   :  { %v2875_v8 = vpop.f32.mrb[4].mxu0 }
 0x34a   :  { %v2877_v9 = vpop.f32.mrb[5].mxu0 }
 0x359   :  { %v2879_v14 = vpop.f32.mrb[6].mxu0 }
 0x35a   :  { %1479 = vrot.lane.b32.xlu0 %v2879_v14, %s2436_s27  ;;  %1317 = vrot.lane.b32.xlu1 %v2879_v14, %s2433_s24  ;;  %v2885_v15 = vpop.f32.mrb[7].mxu0 }
 0x35e   :  { %1566 = vrot.lane.b32.xlu0 %v2879_v14, %s2431_s22  ;;  %1319 = vrot.lane.b32.xlu1 %v2885_v15, %s2433_s24 }
 0x362   :  { %1653 = vrot.lane.b32.xlu0 %v2879_v14, %s2430_s2  ;;  %1481 = vrot.lane.b32.xlu1 %v2885_v15, %s2436_s27 }
 0x366   :  { %1740 = vrot.lane.b32.xlu0 %v2879_v14, %s2432_s23  ;;  %1568 = vrot.lane.b32.xlu1 %v2885_v15, %s2431_s22 }
 0x36a   :  { %1827 = vrot.lane.b32.xlu0 %v2879_v14, %s2434_s25  ;;  %1655 = vrot.lane.b32.xlu1 %v2885_v15, %s2430_s2 }
 0x36e   :  { %1914 = vrot.lane.b32.xlu0 %v2879_v14, %s2435_s26  ;;  %1742 = vrot.lane.b32.xlu1 %v2885_v15, %s2432_s23 }
 0x372   :  { %2001 = vrot.lane.b32.xlu0 %v2879_v14, %s2437_s28  ;;  %1829 = vrot.lane.b32.xlu1 %v2885_v15, %s2434_s25 }
 0x376   :  { %1234 = vperm.xlu0 %2426, %v83_v20   ;;  %1916 = vrot.lane.b32.xlu1 %v2885_v15, %s2435_s26 }
 0x37a   :  { %2003 = vrot.lane.b32.xlu1 %v2885_v15, %s2437_s28 }
 0x3cc   :  { %v1318_v21 = vpop.permute.xlu1 %1317  ;;  %v1480_v24 = vpop.permute.xlu0 %1479 }
 0x3d0   :  { %v1320_v27 = vpop.permute.xlu1 %1319  ;;  %v1567_v1 = vpop.permute.xlu0 %1566 }
 0x3d1   :  { %v1321_v56 = vsel %vm166_vm6, %v1318_v21, %v1320_v27  ;;  %v1322_v57 = vsel %vm166_vm6, %v1320_v27, %v1318_v21 }
 0x3d2   :  { %v1323_v58 = vmul.f32 %v1322_v57, %v2670_v61  ;;  %v1324_v60 = vmul.f32 %v1321_v56, %v2673_v62 }
 0x3d4   :  { %2312 = vmatprep.subr.msk.mxu1 %vm186_vm3, %v1324_v60  ;;  %v1482_v6 = vpop.permute.xlu1 %1481  ;;  %v1654_v62 = vpop.permute.xlu0 %1653 }
 0x3d5   :  { %v1483_v34 = vsel %vm348_vm9, %v1480_v24, %v1482_v6  ;;  %2313 = vmatpush1.msk.msra.mxu1 %vm186_vm3, %v1323_v58  ;;  %v1484_v16 = vsel %vm348_vm9, %v1482_v6, %v1480_v24 }
 0x3d6   :  { %v1486_v10 = vmul.f32 %v1483_v34, %v2739_v36  ;;  %2314 = vmatmul.mubr.msk.f32.vlgmr.msra.gmra.mrb[2].mxu1 %vm182_vm5, %v2699_v13  ;;  %2315 = vmatprep.subr.msk.mxu1 %vm186_vm3, %v2885_v15  ;;  %v1485_v13 = vmul.f32 %v1484_v16, %v2736_v35 }
 0x3d7   :  { %2316 = vmatpush1.msk.msra.mxu1 %vm186_vm3, %v2879_v14  ;;  %1472 = vmatprep.mubr.f32.mxu1 %v2429_v3 }
 0x3d8   :  { %2318 = vmatprep.subr.msk.mxu1 %vm186_vm3, %v1486_v10  ;;  %v1569_v61 = vpop.permute.xlu1 %1568  ;;  %v1741_v19 = vpop.permute.xlu0 %1740 }
 0x3d9   :  { %v1570_v36 = vsel %vm450_vm2, %v1567_v1, %v1569_v61  ;;  %v1571_v25 = vsel %vm450_vm2, %v1569_v61, %v1567_v1 }
 0x3da   :  { %v1573_v17 = vmul.f32 %v1570_v36, %v2625_v40  ;;  %v1572_v35 = vmul.f32 %v1571_v25, %v2622_v39 }
 0x3dc   :  { %v1656_v22 = vpop.permute.xlu1 %1655  ;;  %v1828_v40 = vpop.permute.xlu0 %1827 }
 0x3dd   :  { %v1657_v28 = vsel %vm552_vm1, %v1654_v62, %v1656_v22  ;;  %v1658_v30 = vsel %vm552_vm1, %v1656_v22, %v1654_v62 }
 0x3de   :  { %2317 = vmatmul.mubr.msk.f32.vlgmr.msra.gmra.mrb[2].mxu1 %vm182_vm5, %v2749_v41  ;;  %v1660_v29 = vmul.f32 %v1657_v28, %v2634_v43  ;;  %v1659_v44 = vmul.f32 %v1658_v30, %v2631_v42 }
 0x3df   :  { %2319 = vmatpush1.msk.msra.mxu1 %vm186_vm3, %v1485_v13  ;;  %1557 = vmatprep.mubr.f32.mxu1 %v2429_v3 }
 0x3e0   :  { %2321 = vmatprep.subr.msk.mxu1 %vm186_vm3, %v1573_v17  ;;  %v1743_v41 = vpop.permute.xlu1 %1742  ;;  %v1915_v37 = vpop.permute.xlu0 %1914 }
 0x3e1   :  { %v1745_v39 = vsel %vm654_vm4, %v1743_v41, %v1741_v19  ;;  %v1744_v46 = vsel %vm654_vm4, %v1741_v19, %v1743_v41 }
 0x3e2   :  { %v1747_v43 = vmul.f32 %v1745_v39, %v2648_v52  ;;  %v1746_v42 = vmul.f32 %v1744_v46, %v2682_v2 }
 0x3e4   :  { %v2002_v45 = vpop.permute.xlu0 %2001 }
 0x3e6   :  { %2320 = vmatmul.mubr.msk.f32.vlgmr.msra.gmra.mrb[2].mxu1 %vm182_vm5, %v2791_v0  ;;  %v1830_v0 = vpop.permute.xlu1 %1829 }
 0x3e7   :  { %2322 = vmatpush1.msk.msra.mxu1 %vm186_vm3, %v1572_v35  ;;  %1644 = vmatprep.mubr.f32.mxu1 %v2429_v3  ;;  %v1832_v48 = vsel %vm756_vm7, %v1830_v0, %v1828_v40  ;;  %v1831_v2 = vsel %vm756_vm7, %v1828_v40, %v1830_v0 }
 0x3e8   :  { %2324 = vmatprep.subr.msk.mxu1 %vm186_vm3, %v1660_v29  ;;  %v1834_v49 = vmul.f32 %v1832_v48, %v2692_v11 }
 0x3ea   :  { %v1917_v51 = vpop.permute.xlu1 %1916 }
 0x3eb   :  { %v1919_v11 = vsel %vm858_vm8, %v1917_v51, %v1915_v37 }
 0x3ec   :  { %v1921_v54 = vmul.f32 %v1919_v11, %v2744_v38 }
 0x3ee   :  { %2323 = vmatmul.mubr.msk.f32.vlgmr.msra.gmra.mrb[2].mxu1 %vm182_vm5, %v2653_v53  ;;  %v2004_v4 = vpop.permute.xlu1 %2003 }
 0x3ef   :  { %2325 = vmatpush1.msk.msra.mxu1 %vm186_vm3, %v1659_v44  ;;  %1731 = vmatprep.mubr.f32.mxu1 %v2429_v3 }
 0x3f0   :  { %2327 = vmatprep.subr.msk.mxu1 %vm186_vm3, %v1747_v43 }
 0x3f5   :  { %v1235_v52 = vpop.permute.xlu0 %1234 }
 0x3f6   :  { %v1237_v53 = vadd.f32 %v1235_v52, %v2875_v8  ;;  %v1238_v50 = vadd.f32 %v1235_v52, %v2877_v9  ;;  %2326 = vmatmul.mubr.msk.f32.vlgmr.msra.gmra.mrb[2].mxu1 %vm182_vm5, %v2705_v18  ;;  %v1833_v18 = vmul.f32 %v1831_v2, %v2732_v31  ;;  %v1918_v8 = vsel %vm858_vm8, %v1915_v37, %v1917_v51 }
 0x3f7   :  { %2328 = vmatpush1.msk.msra.mxu1 %vm186_vm3, %v1746_v42  ;;  %1818 = vmatprep.mubr.f32.mxu1 %v2429_v3  ;;  %v2006_v9 = vsel %vm960_vm10, %v2004_v4, %v2002_v45  ;;  %v1920_v31 = vmul.f32 %v1918_v8, %v2780_v59 }
 0x3f8   :  { %1239 = vst [vmem:[%s3051_s9] sm:$0xff] %v1237_v53  ;;  %1240 = vst [vmem:[%s3051_s9 + $0x8] sm:$0xff] %v1238_v50  ;;  %2330 = vmatprep.subr.msk.mxu1 %vm186_vm3, %v1834_v49  ;;  %v2008_v38 = vmul.f32 %v2006_v9, %v2786_v63 }
 0x3fe   :  { %2329 = vmatmul.mubr.msk.f32.vlgmr.msra.gmra.mrb[2].mxu1 %vm182_vm5, %v2756_v47  ;;  %v2005_v47 = vsel %vm960_vm10, %v2002_v45, %v2004_v4 }
 0x3ff   :  { %2331 = vmatpush1.msk.msra.mxu1 %vm186_vm3, %v1833_v18  ;;  %1905 = vmatprep.mubr.f32.mxu1 %v2429_v3  ;;  %v2007_v20 = vmul.f32 %v2005_v47, %v2811_v7 }
 0x400   :  { %2333 = vmatprep.subr.msk.mxu1 %vm186_vm3, %v1921_v54 }
 0x406   :  { %2332 = vmatmul.mubr.msk.f32.vlgmr.msra.gmra.mrb[2].mxu1 %vm182_vm5, %v2798_v5 }
 0x407   :  { %2334 = vmatpush1.msk.msra.mxu1 %vm186_vm3, %v1920_v31  ;;  %1992 = vmatprep.mubr.f32.mxu1 %v2429_v3 }
 0x408   :  { %2336 = vmatprep.subr.msk.mxu1 %vm186_vm3, %v2008_v38 }
 0x40e   :  { %2335 = vmatmul.mubr.msk.f32.vlgmr.msra.gmra.mrb[2].mxu1 %vm182_vm5, %v2818_v12  ;;  %v2339_v12 = vld [vmem:[%s3047_s1 + $0x8] sm:$0xff] }
 0x40f   :  { %2337 = vmatpush1.msk.msra.mxu1 %vm186_vm3, %v2007_v20  ;;  %2079 = vmatprep.mubr.f32.mxu1 %v2429_v3  ;;  %v2176_v57 = vcombine.high %v2339_v12, %v2339_v12 }
 0x416   :  { %2338 = vmatmul.mubr.msk.f32.vlgmr.msra.gmra.mrb[2].mxu1 %vm182_vm5, %v2828_v33 }
 0x4e9   :  { %v2081_v59 = vpop.f32.mrb[2].mxu1 }
 0x4ea   :  { %v2088_v63 = vadd.f32 %v2081_v59, %v2833_v23  ;;  %v2083_v5 = vpop.f32.mrb[3].mxu1 }
 0x4eb   :  { %v2089_v21 = vadd.f32 %v2083_v5, %v2833_v23 }
 0x4ec   :  { %v2090_v32 = vadd.f32 %v2088_v63, %v2879_v14 }
 0x4ed   :  { %v2091_v7 = vadd.f32 %v2089_v21, %v2885_v15 }
 0x4ee   :  { %v2092_v24 = vmul.f32 0.01, %v2090_v32 }
 0x4ef   :  { %v2093_v27 = vmul.f32 0.01, %v2091_v7 }
 0x4f0   :  { %v2094_v58 = vmax.f32 %v2090_v32, %v2092_v24 }
 0x4f1   :  { %v2095_v56 = vmax.f32 %v2091_v7, %v2093_v27 }
 0x4f3   :  { %2340 = vmatprep.subr.msk.mxu0 %vm186_vm3, %v2095_v56 }
 0x4f4   :  { %2341 = vmatpush1.msk.msra.mxu0 %vm186_vm3, %v2094_v58 }
 0x4f5   :  { %2342 = vmatmul.mubr.msk.f32.vlgmr.msra.gmra.mrb[8].mxu0 %vm182_vm5, %v2845_v55  ;;  %2343 = vmatprep.subr.msk.mxu0 %vm186_vm3, %v2176_v57 }
 0x4f6   :  { %2344 = vmatpush1.msk.msra.mxu0 %vm186_vm3, %v2339_v12  ;;  %2245 = vmatprep.mubr.f32.mxu0 %v2429_v3 }
 0x4fd   :  { %2345 = vmatmul.mubr.msk.f32.vlgmr.msra.gmra.mrb[8].mxu0 %vm182_vm5, %v2858_v26 }
 0x5d0   :  { %v2247_v33 = vpop.f32.mrb[8].mxu0 }
 0x5d1   :  { %v2252_v23 = vadd.f32 %v2247_v33, %v1235_v52  ;;  %v2249_v14 = vpop.f32.mrb[9].mxu0 }
 0x5d2   :  { %v2253_v15 = vadd.f32 %v2249_v14, %v1235_v52 }
 0x5d3   :  { %2346 = vst [vmem:[%s3051_s9 + $0x10] sm:$0xff] %v2252_v23 }
 0x5d4   :  { %2347 = vst [vmem:[%s3051_s9 + $0x18] sm:$0xff] %v2253_v15 }

</bundles_post_ra>
